<compile_context>
chip_gen: v6e
topology: v6e:2x2x1
jax: 0.10.0
libtpu: 0.0.40
codegen_flags: <defaults>
</compile_context>

<pallas_src>
import jax
import jax.numpy as jnp
from jax.experimental import pallas as pl
from jax.experimental.pallas import tpu as pltpu


def _basic_block_kernel(x_ref, w_ref, shift_ref, o_ref):
    x = x_ref[0]                                                      # (C, TL) f32
    # 1x1 Conv1d == channel matmul on the MXU, f32 accumulation.
    y = jnp.dot(w_ref[...], x, preferred_element_type=jnp.float32)    # (C, TL)
    # Folded BatchNorm shift + ReLU (VPU).
    y = jnp.maximum(y + shift_ref[...], 0.0)
    # Identity residual + final ReLU.
    y = jnp.maximum(y + x, 0.0)
    o_ref[0] = y.astype(o_ref.dtype)


def basic_block_forward(x, conv_w, bn_gamma, bn_beta, bn_mean, bn_var,
                        eps=1e-5, tile_l=1024):
    """Fused BasicBlock forward (downsample=None, stride=1 path).

    x:       (B, C, L) float32, channels-first (PyTorch Conv1d layout)
    conv_w:  (C, C)    float32, Conv1d(kernel_size=1) weight with the k-dim squeezed
    bn_*:    (C,)      float32, BatchNorm1d affine params / running stats
    """
    B, C_in, L = x.shape
    C_out = conv_w.shape[0]
    assert C_out == C_in, "identity residual requires planes == inplanes"
    # TODO(synk): downsample / stride>1 residual path (strided 1x1 conv + BN on
    # the residual) not implemented; default BasicBlock uses downsample=None, stride=1.

    # Fold inference-mode BN into the conv:  bn(conv(x)) = (W_eff x) + shift
    scale = bn_gamma / jnp.sqrt(bn_var + eps)                  # (C,)
    w_eff = (conv_w * scale[:, None]).astype(jnp.float32)      # (C, C)
    shift = (bn_beta - bn_mean * scale)[:, None].astype(jnp.float32)  # (C, 1)

    # Lane-dense tiling of the length axis: tile is a multiple of 128, as large
    # as tile_l (big tiles amortize the ~0.35us per-grid-step overhead), and no
    # larger than L rounded up to 128 (avoids padding for short sequences).
    tl = min(max(tile_l, 128), pl.cdiv(L, 128) * 128)
    tl = (tl // 128) * 128
    L_pad = pl.cdiv(L, tl) * tl
    if L_pad != L:
        x = jnp.pad(x, ((0, 0), (0, 0), (0, L_pad - L)))

    grid = (B, L_pad // tl)
    flops = 2 * B * C_out * C_in * L_pad + 4 * B * C_out * L_pad
    bytes_accessed = 4 * (B * C_in * L_pad + C_out * C_in + C_out
                          + B * C_out * L_pad)

    out = pl.pallas_call(
        _basic_block_kernel,
        out_shape=jax.ShapeDtypeStruct((B, C_out, L_pad), jnp.float32),
        grid_spec=pltpu.PrefetchScalarGridSpec(
            num_scalar_prefetch=0,
            grid=grid,
            in_specs=[
                pl.BlockSpec((1, C_in, tl), lambda b, l: (b, 0, l)),   # streamed x
                pl.BlockSpec((C_out, C_in), lambda b, l: (0, 0)),      # resident W_eff
                pl.BlockSpec((C_out, 1), lambda b, l: (0, 0)),         # resident shift
            ],
            out_specs=pl.BlockSpec((1, C_out, tl), lambda b, l: (b, 0, l)),
        ),
        compiler_params=pltpu.CompilerParams(
            dimension_semantics=("parallel", "parallel"),
            vmem_limit_bytes=64 << 20),
        cost_estimate=pl.CostEstimate(flops=flops, transcendentals=0,
                                      bytes_accessed=bytes_accessed),
    )(x, w_eff, shift)

    if L_pad != L:
        out = out[:, :, :L]
    return out


if __name__ == "__main__":
    # Small config consistent with the module: inplanes = planes = 64,
    # stride = 1, downsample = None, sequence length 256, batch 4.
    B, C, L = 4, 64, 256
    key = jax.random.PRNGKey(0)
    kx, kw, kg, kb, km, kv = jax.random.split(key, 6)
    x = jax.random.normal(kx, (B, C, L), jnp.float32)
    conv_w = jax.random.normal(kw, (C, C), jnp.float32) / jnp.sqrt(C)
    gamma = jax.random.uniform(kg, (C,), jnp.float32, 0.5, 1.5)
    beta = 0.1 * jax.random.normal(kb, (C,), jnp.float32)
    mean = 0.1 * jax.random.normal(km, (C,), jnp.float32)
    var = jax.random.uniform(kv, (C,), jnp.float32, 0.5, 1.5)

    out = basic_block_forward(x, conv_w, gamma, beta, mean, var)
    out = jax.block_until_ready(out)

    # Pure-JAX reference of the same BasicBlock forward (inference-mode BN).
    y = jnp.einsum('oc,bcl->bol', conv_w, x)
    y = (y - mean[None, :, None]) / jnp.sqrt(var + 1e-5)[None, :, None]
    y = y * gamma[None, :, None] + beta[None, :, None]
    y = jnp.maximum(y, 0.0)
    ref = jnp.maximum(y + x, 0.0)

    assert out.shape == (B, C, L)
    assert jnp.allclose(out, ref, atol=1e-4, rtol=1e-4), \
        float(jnp.max(jnp.abs(out - ref)))

    print("KERNEL_OK")
</pallas_src>

<mosaic_0001>
module attributes {stable_mosaic.version = 11 : i64} {
  func.func @_basic_block_kernel(%arg0: i32, %arg1: i32, %arg2: memref<1x64x256xf32, #tpu.memory_space<vmem>>, %arg3: memref<64x64xf32, #tpu.memory_space<vmem>>, %arg4: memref<64x1xf32, #tpu.memory_space<vmem>>, %arg5: memref<1x64x256xf32, #tpu.memory_space<vmem>>) attributes {dimension_semantics = [#tpu.dimension_semantics<parallel>, #tpu.dimension_semantics<parallel>], iteration_bounds = array<i64: 4, 1>, scalar_prefetch = 0 : i64, scratch_operands = 0 : i64, tpu.core_type = #tpu.core_type<tc>, window_params = [{transform_indices = @transform_0, window_bounds = array<i64: 1, 64, 256>}, {pipeline_mode = #tpu.pipeline_mode<synchronous>, transform_indices = @transform_1, window_bounds = array<i64: 64, 64>}, {pipeline_mode = #tpu.pipeline_mode<synchronous>, transform_indices = @transform_2, window_bounds = array<i64: 64, 1>}, {transform_indices = @transform_3, window_bounds = array<i64: 1, 64, 256>}]} {
    %c0 = arith.constant 0 : index
    %c0_0 = arith.constant 0 : index
    %c0_1 = arith.constant 0 : index
    %0 = vector.load %arg2[%c0, %c0_0, %c0_1] : memref<1x64x256xf32, #tpu.memory_space<vmem>>, vector<1x64x256xf32>
    %1 = vector.shape_cast %0 : vector<1x64x256xf32> to vector<64x256xf32>
    %c0_2 = arith.constant 0 : index
    %c0_3 = arith.constant 0 : index
    %2 = vector.load %arg3[%c0_2, %c0_3] : memref<64x64xf32, #tpu.memory_space<vmem>>, vector<64x64xf32>
    %cst = arith.constant dense<0.000000e+00> : vector<64x256xf32>
    %3 = tpu.matmul %2, %1, %cst {dimension_numbers = #tpu.dot_dimension_numbers<[1], [0], [0], [1], [0, 0, 1, 1], [], []>} : vector<64x64xf32>, vector<64x256xf32>, vector<64x256xf32> -> vector<64x256xf32>
    %c0_4 = arith.constant 0 : index
    %c0_5 = arith.constant 0 : index
    %4 = vector.load %arg4[%c0_4, %c0_5] : memref<64x1xf32, #tpu.memory_space<vmem>>, vector<64x1xf32>
    %5 = vector.broadcast %4 : vector<64x1xf32> to vector<64x256xf32>
    %6 = arith.addf %3, %5 : vector<64x256xf32>
    %cst_6 = arith.constant 0.000000e+00 : f32
    %7 = vector.broadcast %cst_6 : f32 to vector<64x256xf32>
    %8 = arith.maximumf %6, %7 : vector<64x256xf32>
    %9 = arith.addf %8, %1 : vector<64x256xf32>
    %cst_7 = arith.constant 0.000000e+00 : f32
    %10 = vector.broadcast %cst_7 : f32 to vector<64x256xf32>
    %11 = arith.maximumf %9, %10 : vector<64x256xf32>
    %c0_8 = arith.constant 0 : index
    %c0_9 = arith.constant 0 : index
    %c0_10 = arith.constant 0 : index
    %12 = vector.load %arg5[%c0_8, %c0_9, %c0_10] : memref<1x64x256xf32, #tpu.memory_space<vmem>>, vector<1x64x256xf32>
    %13 = vector.shape_cast %12 : vector<1x64x256xf32> to vector<64x256xf32>
    %14 = vector.shape_cast %11 : vector<64x256xf32> to vector<1x64x256xf32>
    tpu.vector_store %arg5[%c0_8, %c0_9, %c0_10], %14 {strides = array<i32>} : memref<1x64x256xf32, #tpu.memory_space<vmem>>, vector<1x64x256xf32>,
    return
  }
  func.func @transform_0(%arg0: i32, %arg1: i32) -> (i32, i32, i32) {
    %c0_i32 = arith.constant 0 : i32
    %c0_i32_0 = arith.constant 0 : i32
    return %arg0, %c0_i32, %arg1 : i32, i32, i32
  }
  func.func @transform_1(%arg0: i32, %arg1: i32) -> (i32, i32) {
    %c0_i32 = arith.constant 0 : i32
    %c0_i32_0 = arith.constant 0 : i32
    %c0_i32_1 = arith.constant 0 : i32
    return %c0_i32, %c0_i32_0 : i32, i32
  }
  func.func @transform_2(%arg0: i32, %arg1: i32) -> (i32, i32) {
    %c0_i32 = arith.constant 0 : i32
    %c0_i32_0 = arith.constant 0 : i32
    %c0_i32_1 = arith.constant 0 : i32
    return %c0_i32, %c0_i32_0 : i32, i32
  }
  func.func @transform_3(%arg0: i32, %arg1: i32) -> (i32, i32, i32) {
    %c0_i32 = arith.constant 0 : i32
    %c0_i32_0 = arith.constant 0 : i32
    return %arg0, %c0_i32, %arg1 : i32, i32, i32
  }
}

</mosaic_0001>

<bundles_post_ra>
// kernel: tpu_custom_call.1
= control target key start
LH: loop header
LB: loop body
LE: loop exit
PB: predicated region body
PF: predicated region fallthrough
CT: control target
= control target key end

     0   :  { %8 = vsyncpa [#allocation3], 0  ;;  %s1168_s0 = inlined_call_operand.hbm [shape: f32[4,64,256], index: 0, kind: input, shape index: {}]   ;;  %s1169_s1 = inlined_call_operand.vmem [shape: f32[64,64], index: 1, kind: input, shape index: {}]   ;;  %s1170_s2 = inlined_call_operand.vmem [shape: f32[64,1], index: 2, kind: input, shape index: {}]   ;;  %s1171_s3 = inlined_call_operand.hbm [shape: f32[4,64,256], index: 3, kind: output, shape index: {}]  }
   0x1   :  { %10 = vsyncpa [#allocation3 + $0x1], 0 }
   0x2   :  { %11 = vsyncpa [#allocation4], 0 }
   0x3   :  { %13 = vsyncpa [#allocation4 + $0x1], 0  ;;  %s835_s12 = smov 0   ;;  %s837_s13 = smov 0  }
   0x4   :  { %s839_s14 = smov 0   ;;  %s841_s15 = smov 0  }
   0x5   :  { %s843_s16 = smov 0   ;;  %s845_s17 = smov 0  }
   0x6 LB: > { %s586_s18 = sadd.s32 4294967295, %s805_s17   ;;  %s587_s19 = sadd.s32 4294967294, %s805_s17   ;;  %s805_s17 = sphi %s845_s17, %s19_s17   ;;  %s801_s16 = sphi %s843_s16, %s1181_s16   ;;  %s797_s15 = sphi %s841_s15, %s1180_s15   ;;  %s793_s14 = sphi %s839_s14, %s1179_s14   ;;  %s789_s13 = sphi %s837_s13, %s1178_s13   ;;  %s785_s12 = sphi %s835_s12, %s1177_s12  }
   0x7   : > { %s31_s20 = sadd.s32 1, %s801_s16  ;;  %s40_s21 = sadd.s32 1, %s793_s14 }
   0x8   : > { %p33_p0 = scmp.ge.s32.totalorder %s31_s20, 4  ;;  %p47_p1 = scmp.ne.s32.totalorder %s793_s14, %s789_s13 }
   0x9   : > { %p48_p2 = scmp.eq.s32.totalorder %s805_s17, 0  ;;  %p53_p3 = scmp.ne.s32.totalorder %s789_s13, %s785_s12 }
   0xa   : > { %s1183_s20 = smov (%p33_p0, %s31_s20), 0  ;;  %p54_p5 = scmp.eq.s32.totalorder %s586_s18, 0 }
   0xb   : > { %p876_p4 = por %p48_p2, %p47_p1  ;;  %s35_s23 = ssub.s32 %s801_s16, %s1183_s20 }
   0xc   : > { %p121_p6 = scmp.eq.s32.totalorder %s586_s18, 3  ;;  %p38_p7 = scmp.eq.s32.totalorder %s35_s23, 0 }
   0xd   : > { %p882_p8 = por %p54_p5, %p53_p3  ;;  %p127_p10 = scmp.eq.s32.totalorder %s587_s19, 3 }
   0xe   : > { %p886_p9 = por %p121_p6, %p47_p1  ;;  %p639_p12 = scmp.lt.s32.totalorder %s805_s17, 4 }
   0xf   : > { %s891_s26 = scalar_select %p38_p7, %s793_s14, %s40_s21  }
  0x10   : > { %p893_p11 = por %p127_p10, %p53_p3  ;;  %s153_s28 = sand.u32 1, %s793_s14  }
  0x11   : > { %s590_s29 = sshll.u32 %s153_s28, 7  ;;  %s609_s30 = sshll.u32 %s801_s16, 11 }
  0x12   : > { %s165_s6 = scalar_lea.hbm %s1168_s0, %s609_s30  ;;  %s157_s7 = scalar_lea.vmem [#allocation2], %s590_s29 }
  0x13   : > { %s166_s8 = sshll.u32 %s157_s7, 4  ;;  %p905_p13 = pnand %p639_p12, %p876_p4  ;;  %s167_s8 = int_to_ptr.vmem [resolvable:$true] %s166_s8 }
  0x14   : > { %p593_p0 = scmp.ge.s32.totalorder %s805_s17, 1  ;;  %s154_s10 = scalar_lea.sflag [#allocation3], %s153_s28 }
  0x15   : > { %p699_p1 = pneg %p905_p13  ;;  %s710_s11 = scalar_lea.vmem %s167_s8, 2048 }
  0x16   : > { %p711_p2 = scmp.ne.s32.totalorder %s167_s8, %s710_s11  ;;  %s807_s18 = smov [#allocation2]  }
  0x17   : > { %s715_s19 = sshll.u32 %s807_s18, 4  ;;  %s716_s19 = int_to_ptr.vmem [resolvable:$false] %s715_s19 }
  0x18   : > { %p713_p3 = pnand %p711_p2, %p699_p1  ;;  %s717_s21 = scalar_lea.vmem %s716_s19, 4096 }
  0x19   : > { %p718_p6 = scmp.lt.s32.totalorder %s167_s8, %s716_s19  ;;  %p719_p7 = scmp.lt.s32.totalorder %s717_s21, %s710_s11 }
  0x1a   : > { %p714_p5 = pneg %p713_p3 }
  0x1b   : > { %p720_p10 = por %p719_p7, %p718_p6 }
  0x1d   : > { %p721_p4 = pnand %p720_p10, %p714_p5 }
  0x1f   : > { %724 = shalt.err (!%p721_p4)
}
  0x20   : > { %s808_s22 = smov 256   ;;  %s809_s23 = smov 16  }
  0x21   : > { %634 = dma.hbm_to_vmem [thread:$0]  (!%p905_p13), %s165_s6, 2048, %s167_s8, %s154_s10, %s808_s22, %s808_s22, %s809_s23  }
  0x22   : > { %p174_p12 = scmp.lt.s32.totalorder %s805_s17, 5 }
  0x24   : > { %p175_p1 = pnand %p593_p0, %p174_p12 }
  0x25   : > { %s918_s28 = sand.u32 (!%p175_p1), 1, %s789_s13  }
  0x26   : > { %178 = sbr.rel (%p175_p1) target bundleno = 293 (0x125), region = 32  ;;  %s594_s29 = sshll.u32 (!%p175_p1), %s918_s28, 7 }
  0x27   : > { %s181_s30 = scalar_lea.sflag (!%p175_p1), [#allocation3], %s918_s28  ;;  %s924_s4 = scalar_lea.vmem (!%p175_p1), [#allocation2], %s594_s29 }
  0x2b   : > { %776 = dma.done.wait (%p882_p8), %s181_s30, 2048  }
  0x2c   : > { %778 = vsyncadd (%p882_p8), %s181_s30, 4294965248  ;;  %v810_v0 = vmov 0.0   ;;  %v811_v1 = vmov 0   ;;  %v933_v2 = vld [vmem:[%s924_s4 + $0x78] sm:$0xff]  ;;  %v936_v3 = vld [vmem:[%s924_s4 + $0x70] sm:$0xff]  ;;  %vm281_vm0 = vcmask 523264  }
  0x2d   : > { %370 = vmatprep.mubr.f32.mxu0 %v810_v0  ;;  %394 = vmatprep.mubr.f32.mxu1 %v810_v0  ;;  %v939_v4 = vld [vmem:[%s924_s4 + $0x68] sm:$0xff]  ;;  %v944_v5 = vld [vmem:[%s924_s4 + $0x60] sm:$0xff]  ;;  %v949_v6 = vld [vmem:[%s924_s4 + $0x58] sm:$0xff]  ;;  %s1082_s6 = scalar_lea.vmem [#allocation5], %s594_s29  ;;  %s610_s29 = sshll.u32 %s797_s15, 11 }
  0x2e   : > { %696 = vset.pattern.permute.xlu1 %v811_v1  ;;  %695 = vset.pattern.permute.xlu0 %v811_v1  ;;  %v954_v7 = vld [vmem:[%s924_s4 + $0x50] sm:$0xff]  ;;  %v959_v8 = vld [vmem:[%s924_s4 + $0x48] sm:$0xff]  ;;  %v964_v9 = vld [vmem:[%s924_s4 + $0x40] sm:$0xff]  ;;  %s499_s7 = sshll.u32 %s1082_s6, 4  ;;  %s1115_s10 = scalar_lea.hbm %s1171_s3, %s610_s29  ;;  %s1117_s7 = int_to_ptr.vmem [resolvable:$true] %s499_s7 }
  0x2f   : > { %322 = vmatprep.subr.mxu0 %v933_v2  ;;  %611 = vmatprep.subr.mxu1 %v933_v2  ;;  %v969_v10 = vld [vmem:[%s924_s4 + $0x38] sm:$0xff]  ;;  %v974_v11 = vld [vmem:[%s924_s4 + $0x30] sm:$0xff]  ;;  %v979_v12 = vld [vmem:[%s924_s4 + $0x28] sm:$0xff]  ;;  %s484_s15 = scalar_lea.sflag [#allocation4], %s918_s28  ;;  %s725_s11 = scalar_lea.vmem %s1117_s7, 2048 }
  0x30   : > { %323 = vmatpush1.msra.mxu0 %v936_v3  ;;  %619 = vmatpush1.msra.mxu1 %v936_v3  ;;  %v984_v13 = vld [vmem:[%s924_s4 + $0x20] sm:$0xff]  ;;  %v989_v14 = vld [vmem:[%s924_s4 + $0x18] sm:$0xff]  ;;  %v994_v15 = vld [vmem:[%s924_s4 + $0x10] sm:$0xff]  ;;  %p726_p8 = scmp.ne.s32.totalorder %s1117_s7, %s725_s11  ;;  %s812_s18 = smov [#allocation5]  }
  0x31   : > { %324 = vmatprep.subr.mxu0 %v939_v4  ;;  %612 = vmatprep.subr.mxu1 %v939_v4  ;;  %v999_v16 = vld [vmem:[%s924_s4 + $0x8] sm:$0xff]  ;;  %v1004_v17 = vld [vmem:[%s924_s4] sm:$0xff]  ;;  %v235_v20 = vld [vmem:[%s1170_s2 + $0x10] sm:$0xff]  ;;  %s729_s19 = sshll.u32 %s812_s18, 4  ;;  %s730_s19 = int_to_ptr.vmem [resolvable:$false] %s729_s19 }
  0x32   : > { %325 = vmatpush1.msra.mxu0 %v944_v5  ;;  %620 = vmatpush1.msra.mxu1 %v944_v5  ;;  %v225_v18 = vld [vmem:[%s1169_s1] sm:$0xff]  ;;  %v226_v22 = vld [vmem:[%s1169_s1 + $0x8] sm:$0xff]  ;;  %v236_v24 = vld [vmem:[%s1170_s2 + $0x18] sm:$0xff]  ;;  %p727_p13 = pnand %p726_p8, %p886_p9  ;;  %s731_s21 = scalar_lea.vmem %s730_s19, 4096 }
  0x33   : > { %326 = vmatprep.subr.mxu0 %v949_v6  ;;  %613 = vmatprep.subr.mxu1 %v949_v6  ;;  %v229_v19 = vld [vmem:[%s1169_s1 + $0x20] sm:$0xff]  ;;  %v230_v23 = vld [vmem:[%s1169_s1 + $0x28] sm:$0xff]  ;;  %v227_v26 = vld [vmem:[%s1169_s1 + $0x10] sm:$0xff]  ;;  %p732_p2 = scmp.lt.s32.totalorder %s1117_s7, %s730_s19  ;;  %p733_p3 = scmp.lt.s32.totalorder %s731_s21, %s725_s11 }
  0x34   : > { %327 = vmatpush1.msra.mxu0 %v954_v7  ;;  %621 = vmatpush1.msra.mxu1 %v954_v7  ;;  %v233_v21 = vld [vmem:[%s1170_s2] sm:$0xff]  ;;  %v234_v25 = vld [vmem:[%s1170_s2 + $0x8] sm:$0xff]  ;;  %v231_v27 = vld [vmem:[%s1169_s1 + $0x30] sm:$0xff]  ;;  %p728_p0 = pneg %p727_p13 }
  0x35   : > { %328 = vmatprep.subr.mxu0 %v959_v8  ;;  %614 = vmatprep.subr.mxu1 %v959_v8  ;;  %v238_v28 = vld [vmem:[%s1170_s2 + $0x28] sm:$0xff]  ;;  %v237_v29 = vld [vmem:[%s1170_s2 + $0x20] sm:$0xff]  ;;  %v228_v30 = vld [vmem:[%s1169_s1 + $0x18] sm:$0xff]  ;;  %p734_p5 = por %p733_p3, %p732_p2 }
  0x36   : > { %329 = vmatpush1.msra.mxu0 %v964_v9  ;;  %622 = vmatpush1.msra.mxu1 %v964_v9  ;;  %v232_v31 = vld [vmem:[%s1169_s1 + $0x38] sm:$0xff]  ;;  %v239_v33 = vld [vmem:[%s1170_s2 + $0x30] sm:$0xff] }
  0x37   : > { %330 = vmatprep.subr.mxu0 %v969_v10  ;;  %615 = vmatprep.subr.mxu1 %v969_v10  ;;  %v240_v32 = vld [vmem:[%s1170_s2 + $0x38] sm:$0xff]  ;;  %p735_p6 = pnand %p734_p5, %p728_p0 }
  0x38   : > { %331 = vmatpush1.msra.mxu0 %v974_v11  ;;  %623 = vmatpush1.msra.mxu1 %v974_v11 }
  0x39   : > { %332 = vmatprep.subr.mxu0 %v979_v12  ;;  %616 = vmatprep.subr.mxu1 %v979_v12 }
  0x3a   : > { %333 = vmatpush1.msra.mxu0 %v984_v13  ;;  %624 = vmatpush1.msra.mxu1 %v984_v13 }
  0x3b   : > { %334 = vmatprep.subr.mxu0 %v989_v14  ;;  %617 = vmatprep.subr.mxu1 %v989_v14 }
  0x3c   : > { %335 = vmatpush1.msra.mxu0 %v994_v15  ;;  %625 = vmatpush1.msra.mxu1 %v994_v15 }
  0x3d   : > { %336 = vmatprep.subr.mxu0 %v999_v16  ;;  %618 = vmatprep.subr.mxu1 %v999_v16 }
  0x3e   : > { %337 = vmatpush1.msra.mxu0 %v1004_v17  ;;  %626 = vmatpush1.msra.mxu1 %v1004_v17 }
  0x3f   : > { %596 = vmatmul.mubr.msk.f32.vlgmr.msra.gmra.mxu0 %vm281_vm0, %v225_v18  ;;  %600 = vmatmul.mubr.msk.f32.vlgmr.msra.gmra.mxu1 %vm281_vm0, %v229_v19 }
  0x40   : > { %376 = vmatprep.mubr.f32.mxu0 %v810_v0  ;;  %400 = vmatprep.mubr.f32.mxu1 %v810_v0 }
  0x41   : > { %253 = vperm.xlu1 %696, %v235_v20   ;;  %243 = vperm.xlu0 %695, %v233_v21  }
  0x43   : > { %597 = vmatmul.mubr.msk.f32.gmra.mxu0 %vm281_vm0, %v226_v22  ;;  %601 = vmatmul.mubr.msk.f32.gmra.mxu1 %vm281_vm0, %v230_v23 }
  0x44   : > { %382 = vmatprep.mubr.f32.mxu0 %v810_v0  ;;  %406 = vmatprep.mubr.f32.mxu1 %v810_v0 }
  0x45   : > { %258 = vperm.xlu1 %696, %v236_v24   ;;  %248 = vperm.xlu0 %695, %v234_v25  }
  0x47   : > { %598 = vmatmul.mubr.msk.f32.gmra.mxu0 %vm281_vm0, %v227_v26  ;;  %602 = vmatmul.mubr.msk.f32.gmra.mxu1 %vm281_vm0, %v231_v27 }
  0x48   : > { %388 = vmatprep.mubr.f32.mxu0 %v810_v0  ;;  %412 = vmatprep.mubr.f32.mxu1 %v810_v0 }
  0x49   : > { %268 = vperm.xlu1 %696, %v238_v28   ;;  %263 = vperm.xlu0 %695, %v237_v29  }
  0x4b   : > { %599 = vmatmul.mubr.msk.f32.gmra.mxu0 %vm281_vm0, %v228_v30  ;;  %603 = vmatmul.mubr.msk.f32.gmra.mxu1 %vm281_vm0, %v232_v31 }
  0x4d   : > { %278 = vperm.xlu1 %696, %v240_v32   ;;  %273 = vperm.xlu0 %695, %v239_v33  }
  0xbc   : > { %v244_v34 = vpop.permute.xlu0 %243  ;;  %v254_v35 = vpop.permute.xlu1 %253 }
  0xc0   : > { %v249_v36 = vpop.permute.xlu0 %248  ;;  %v1074_v37 = vpop.permute.xlu1 %258 }
  0xc4   : > { %v264_v38 = vpop.permute.xlu0 %263  ;;  %v269_v51 = vpop.permute.xlu1 %268 }
  0xc8   : > { %v274_v62 = vpop.permute.xlu0 %273 }
  0xff   : > { %v372_v39 = vpop.f32.mrf.mxu0  ;;  %v396_v40 = vpop.f32.mrf.mxu1 }
 0x100   : > { %v373_v41 = vadd.f32 %v372_v39, %v244_v34  ;;  %v397_v42 = vadd.f32 %v396_v40, %v264_v38  ;;  %v279_v39 = vpop.permute.xlu1 %278 }
 0x101   : > { %v374_v43 = vpop.f32.mrf.mxu0  ;;  %v398_v44 = vpop.f32.mrf.mxu1 }
 0x102   : > { %v419_v45 = vmax.f32 %v373_v41, 0.0  ;;  %v427_v46 = vmax.f32 %v397_v42, 0.0  ;;  %v375_v47 = vadd.f32 %v374_v43, %v244_v34  ;;  %v399_v48 = vadd.f32 %v398_v44, %v264_v38 }
 0x103   : > { %v378_v49 = vpop.f32.mrf.mxu0  ;;  %v402_v50 = vpop.f32.mrf.mxu1 }
 0x104   : > { %v435_v52 = vadd.f32 %v419_v45, %v1004_v17  ;;  %v443_v53 = vadd.f32 %v427_v46, %v964_v9  ;;  %v420_v54 = vmax.f32 %v375_v47, 0.0  ;;  %v428_v55 = vmax.f32 %v399_v48, 0.0 }
 0x105   : > { %v379_v56 = vadd.f32 %v378_v49, %v249_v36  ;;  %v403_v57 = vadd.f32 %v402_v50, %v269_v51  ;;  %v380_v58 = vpop.f32.mrf.mxu0  ;;  %v404_v59 = vpop.f32.mrf.mxu1 }
 0x106   : > { %v451_v60 = vmax.f32 %v435_v52, 0.0  ;;  %v459_v61 = vmax.f32 %v443_v53, 0.0  ;;  %v436_v63 = vadd.f32 %v420_v54, %v999_v16  ;;  %v444_v0 = vadd.f32 %v428_v55, %v959_v8 }
 0x107   : > { %v421_v1 = vmax.f32 %v379_v56, 0.0  ;;  %v429_v18 = vmax.f32 %v403_v57, 0.0  ;;  %v381_v19 = vadd.f32 %v380_v58, %v249_v36  ;;  %v405_v17 = vadd.f32 %v404_v59, %v269_v51  ;;  %v384_v20 = vpop.f32.mrf.mxu0  ;;  %v408_v9 = vpop.f32.mrf.mxu1 }
 0x108   : > { %467 = vst [vmem:[%s1082_s6] sm:$0xff] %v451_v60  ;;  %475 = vst [vmem:[%s1082_s6 + $0x40] sm:$0xff] %v459_v61  ;;  %v452_v21 = vmax.f32 %v436_v63, 0.0  ;;  %v460_v22 = vmax.f32 %v444_v0, 0.0  ;;  %v385_v16 = vadd.f32 %v384_v20, %v254_v35  ;;  %v409_v23 = vadd.f32 %v408_v9, %v274_v62 }
 0x109   : > { %v437_v8 = vadd.f32 %v421_v1, %v994_v15  ;;  %v445_v24 = vadd.f32 %v429_v18, %v954_v7  ;;  %v422_v25 = vmax.f32 %v381_v19, 0.0  ;;  %v430_v26 = vmax.f32 %v405_v17, 0.0  ;;  %v386_v27 = vpop.f32.mrf.mxu0  ;;  %v410_v28 = vpop.f32.mrf.mxu1 }
 0x10a   : > { %468 = vst [vmem:[%s1082_s6 + $0x8] sm:$0xff] %v452_v21  ;;  %476 = vst [vmem:[%s1082_s6 + $0x48] sm:$0xff] %v460_v22  ;;  %v423_v29 = vmax.f32 %v385_v16, 0.0  ;;  %v431_v30 = vmax.f32 %v409_v23, 0.0  ;;  %v387_v31 = vadd.f32 %v386_v27, %v254_v35  ;;  %v411_v32 = vadd.f32 %v410_v28, %v274_v62 }
 0x10b   : > { %v453_v33 = vmax.f32 %v437_v8, 0.0  ;;  %v461_v34 = vmax.f32 %v445_v24, 0.0  ;;  %v438_v36 = vadd.f32 %v422_v25, %v989_v14  ;;  %v446_v15 = vadd.f32 %v430_v26, %v949_v6  ;;  %v390_v38 = vpop.f32.mrf.mxu0  ;;  %v414_v7 = vpop.f32.mrf.mxu1 }
 0x10c   : > { %v439_v40 = vadd.f32 %v423_v29, %v984_v13  ;;  %v447_v41 = vadd.f32 %v431_v30, %v944_v5  ;;  %v424_v42 = vmax.f32 %v387_v31, 0.0  ;;  %v432_v43 = vmax.f32 %v411_v32, 0.0 }
 0x10d   : > { %469 = vst [vmem:[%s1082_s6 + $0x10] sm:$0xff] %v453_v33  ;;  %477 = vst [vmem:[%s1082_s6 + $0x50] sm:$0xff] %v461_v34  ;;  %v454_v35 = vmax.f32 %v438_v36, 0.0  ;;  %v462_v44 = vmax.f32 %v446_v15, 0.0  ;;  %v391_v14 = vadd.f32 %v390_v38, %v1074_v37  ;;  %v415_v6 = vadd.f32 %v414_v7, %v279_v39  ;;  %v392_v45 = vpop.f32.mrf.mxu0  ;;  %v416_v46 = vpop.f32.mrf.mxu1 }
 0x10e   : > { %v455_v47 = vmax.f32 %v439_v40, 0.0  ;;  %v463_v48 = vmax.f32 %v447_v41, 0.0  ;;  %v440_v13 = vadd.f32 %v424_v42, %v979_v12  ;;  %v448_v5 = vadd.f32 %v432_v43, %v939_v4 }
 0x10f   : > { %470 = vst [vmem:[%s1082_s6 + $0x18] sm:$0xff] %v454_v35  ;;  %478 = vst [vmem:[%s1082_s6 + $0x58] sm:$0xff] %v462_v44  ;;  %v425_v49 = vmax.f32 %v391_v14, 0.0  ;;  %v433_v50 = vmax.f32 %v415_v6, 0.0  ;;  %v393_v51 = vadd.f32 %v392_v45, %v1074_v37  ;;  %v417_v52 = vadd.f32 %v416_v46, %v279_v39 }
 0x110   : > { %471 = vst [vmem:[%s1082_s6 + $0x20] sm:$0xff] %v455_v47  ;;  %479 = vst [vmem:[%s1082_s6 + $0x60] sm:$0xff] %v463_v48  ;;  %v456_v53 = vmax.f32 %v440_v13, 0.0  ;;  %v464_v54 = vmax.f32 %v448_v5, 0.0 }
 0x111   : > { %v441_v12 = vadd.f32 %v425_v49, %v974_v11  ;;  %v449_v4 = vadd.f32 %v433_v50, %v936_v3  ;;  %v426_v55 = vmax.f32 %v393_v51, 0.0  ;;  %v434_v56 = vmax.f32 %v417_v52, 0.0 }
 0x112   : > { %472 = vst [vmem:[%s1082_s6 + $0x28] sm:$0xff] %v456_v53  ;;  %480 = vst [vmem:[%s1082_s6 + $0x68] sm:$0xff] %v464_v54 }
 0x113   : > { %v457_v37 = vmax.f32 %v441_v12, 0.0  ;;  %v465_v57 = vmax.f32 %v449_v4, 0.0  ;;  %v442_v58 = vadd.f32 %v426_v55, %v969_v10  ;;  %v450_v59 = vadd.f32 %v434_v56, %v933_v2 }
 0x115   : > { %473 = vst [vmem:[%s1082_s6 + $0x30] sm:$0xff] %v457_v37  ;;  %481 = vst [vmem:[%s1082_s6 + $0x70] sm:$0xff] %v465_v57  ;;  %v458_v3 = vmax.f32 %v442_v58, 0.0  ;;  %v466_v11 = vmax.f32 %v450_v59, 0.0 }
 0x117   : > { %474 = vst [vmem:[%s1082_s6 + $0x38] sm:$0xff] %v458_v3  ;;  %482 = vst [vmem:[%s1082_s6 + $0x78] sm:$0xff] %v466_v11 }
 0x118   : > { %738 = shalt.err (!%p735_p6)
}
 0x119   : > { %s739_s22 = scalar_lea.hbm %s1115_s10, 2048  ;;  %s743_s4 = scalar_lea.hbm %s1171_s3, 8192 }
 0x11a   : > { %p740_p7 = scmp.ne.s32.totalorder %s1115_s10, %s739_s22  ;;  %p744_p12 = scmp.lt.s32.totalorder %s1115_s10, %s1171_s3 }
 0x11b   : > { %p745_p1 = scmp.lt.s32.totalorder %s743_s4, %s739_s22 }
 0x11c   : > { %p741_p10 = pnand %p740_p7, %p886_p9 }
 0x11d   : > { %p746_p8 = por %p745_p1, %p744_p12 }
 0x11e   : > { %p742_p4 = pneg %p741_p10 }
 0x120   : > { %p747_p13 = pnand %p746_p8, %p742_p4 }
 0x122   : > { %750 = shalt.err (!%p747_p13)
}
 0x123   : > { %s813_s6 = smov 256   ;;  %s814_s29 = smov 16  }
 0x124   : > { %629 = dma.vmem_to_hbm [thread:$0]  (%p886_p9), %s1117_s7, 2048, %s1115_s10, %s484_s15, %s813_s6, %s813_s6, %s814_s29  }
 0x125 PF: > { %p640_p0 = scmp.ge.s32.totalorder %s805_s17, 2  ;;  %s514_s8 = sand.u32 1, %s785_s12  }
 0x126   : > { %s515_s9 = scalar_lea.sflag [#allocation4], %s514_s8 }
 0x127   : > { %p636_p2 = pnand %p640_p0, %p893_p11 }
 0x129   : > { %p637_p3 = pneg %p636_p2 }
 0x12b   : > { %780 = dma.done.wait (%p637_p3), %s515_s9, 2048  }
 0x12c   : > { %782 = vsyncadd (%p637_p3), %s515_s9, 4294965248  ;;  %s19_s17 = sadd.s32 1, %s805_s17   ;;  %s1177_s12 = smov %s789_s13 }
 0x12d   : > { %p16_p5 = scmp.ge.s32.totalorder %s19_s17, 6   ;;  %s1178_s13 = smov %s793_s14 }
 0x12e   : > { %s1179_s14 = smov %s891_s26  ;;  %s1180_s15 = smov %s801_s16 }
 0x12f   : > { %s1181_s16 = smov %s1183_s20  ;;  %18 = sbr.rel (!%p16_p5) target bundleno = 6 (0x6), region = 77 }
 0x134   :  { %520 = vsyncpa [#allocation3], 1 }
 0x135   :  { %522 = vsyncpa [#allocation3 + $0x1], 1 }
 0x136   :  { %523 = vsyncpa [#allocation4], 1 }
 0x137   :  { %525 = vsyncpa [#allocation4 + $0x1], 1 }

</bundles_post_ra>
